<compile_context>
chip_gen: v7x
topology: tpu7x:2x2x1
jax: 0.10.0
libtpu: 0.0.40
codegen_flags: <defaults>
</compile_context>

<pallas_src>
import jax
import jax.numpy as jnp
from jax import lax
from jax.experimental import pallas as pl
from jax.experimental.pallas import tpu as pltpu


def _round_up(x, m):
    return ((x + m - 1) // m) * m


# --------------------------------------------------------------------------
# Kernels
# --------------------------------------------------------------------------
def _topic_emb_kernel_small(probs_ref, emb_ref, out_ref):
    # probs_ref: [n_docs, n_topics] (untransposed), emb_ref: [n_docs, d_doc]
    # out = probs.T @ doc_emb, as a single lhs-axis-0 contraction on the MXU.
    out_ref[...] = lax.dot_general(
        probs_ref[...],
        emb_ref[...],
        dimension_numbers=(((0,), (0,)), ((), ())),
        preferred_element_type=jnp.float32,
    )


def _topic_emb_kernel_tiled(probs_ref, emb_ref, out_ref, acc_ref):
    # Grid: (d_doc tiles [parallel], docs tiles [arbitrary, innermost]).
    # probs_ref: [tile_k, n_topics], emb_ref: [tile_k, tile_d]
    # acc_ref:   [n_topics, tile_d] f32 accumulator (resident across the K axis)
    k = pl.program_id(1)

    @pl.when(k == 0)
    def _():
        acc_ref[...] = jnp.zeros_like(acc_ref)

    acc_ref[...] += lax.dot_general(
        probs_ref[...],
        emb_ref[...],
        dimension_numbers=(((0,), (0,)), ((), ())),
        preferred_element_type=jnp.float32,
    )

    @pl.when(k == pl.num_programs(1) - 1)
    def _():
        out_ref[...] = acc_ref[...].astype(out_ref.dtype)


# --------------------------------------------------------------------------
# Wrapper
# --------------------------------------------------------------------------
def topic_embedding(probs, doc_emb, *, compute_dtype=jnp.bfloat16,
                    tile_d=None, tile_k=None, force_tiled=False):
    """topic_emb = probs.T @ doc_emb.

    probs:   [n_docs, n_topics]
    doc_emb: [n_docs, d_doc]
    returns: [n_topics, d_doc] float32
    """
    n_docs, n_topics = probs.shape
    n_docs2, d_doc = doc_emb.shape
    assert n_docs == n_docs2

    probs_c = jnp.asarray(probs, compute_dtype)
    emb_c = jnp.asarray(doc_emb, compute_dtype)
    dsize = jnp.dtype(compute_dtype).itemsize

    # Advisory cost estimate so XLA can overlap this (launch-bound) call.
    ce = pl.CostEstimate(
        flops=2 * n_docs * n_topics * d_doc,
        bytes_accessed=dsize * (n_docs * d_doc + n_docs * n_topics)
        + 4 * n_topics * d_doc,
        transcendentals=0,
    )

    # ---------------- small path: single block, no grid ----------------
    single_block_bytes = n_docs * (n_topics + d_doc) * dsize + n_topics * d_doc * 4
    use_small = (not force_tiled and tile_d is None and tile_k is None
                 and single_block_bytes <= (12 << 20))

    if use_small:
        return pl.pallas_call(
            _topic_emb_kernel_small,
            out_shape=jax.ShapeDtypeStruct((n_topics, d_doc), jnp.float32),
            in_specs=[
                pl.BlockSpec(memory_space=pltpu.MemorySpace.VMEM),
                pl.BlockSpec(memory_space=pltpu.MemorySpace.VMEM),
            ],
            out_specs=pl.BlockSpec(memory_space=pltpu.MemorySpace.VMEM),
            cost_estimate=ce,
        )(probs_c, emb_c)

    # ---------------- tiled path: K-tiled accumulator ----------------
    # tile_d (output lane axis): big, multiple of 128 (or full d_doc).
    if tile_d is None:
        tile_d = min(d_doc, 2048)
        if tile_d < d_doc:
            tile_d = max(128, (tile_d // 128) * 128)
        # v7x has 2 TensorCores: give the parallel d_doc axis >= 2 steps
        # whenever the problem is large enough to be worth splitting.
        if d_doc >= 256 and pl.cdiv(d_doc, tile_d) < 2:
            tile_d = _round_up(pl.cdiv(d_doc, 2), 128)
    assert tile_d == d_doc or tile_d % 128 == 0, \
        "tile_d must equal d_doc or be a multiple of 128"

    # tile_k (docs / contraction axis): VMEM-budget driven, n_docs-aware,
    # multiple of 16 sublanes so bf16 K-tiles stay packing-dense.
    if tile_k is None:
        budget = 24 << 20                              # block budget (bytes)
        fixed = 3 * n_topics * tile_d * 4              # out (x2) + f32 acc
        per_k = 2 * (n_topics + tile_d) * dsize        # double-buffered inputs
        tile_k = max(512, (budget - fixed) // per_k)
        tile_k = min(tile_k, _round_up(n_docs, 16))
        tile_k = max(16, (tile_k // 16) * 16)
    assert tile_k % 16 == 0, "tile_k must be a multiple of 16"

    # Zero-pad the docs axis so boundary K-tiles contribute exactly zero.
    n_docs_pad = _round_up(n_docs, tile_k)
    if n_docs_pad != n_docs:
        pad = n_docs_pad - n_docs
        probs_c = jnp.pad(probs_c, ((0, pad), (0, 0)))
        emb_c = jnp.pad(emb_c, ((0, pad), (0, 0)))

    grid = (pl.cdiv(d_doc, tile_d), n_docs_pad // tile_k)

    block_bytes = (2 * tile_k * (n_topics + tile_d) * dsize   # inputs, x2 buf
                   + 2 * n_topics * tile_d * 4                # output, x2 buf
                   + n_topics * tile_d * 4)                   # acc scratch
    vmem_limit = int(min(max(2 * block_bytes, 16 << 20), 48 << 20))

    return pl.pallas_call(
        _topic_emb_kernel_tiled,
        out_shape=jax.ShapeDtypeStruct((n_topics, d_doc), jnp.float32),
        grid_spec=pltpu.PrefetchScalarGridSpec(
            num_scalar_prefetch=0,
            grid=grid,
            in_specs=[
                pl.BlockSpec((tile_k, n_topics), lambda j, k: (k, 0)),
                pl.BlockSpec((tile_k, tile_d), lambda j, k: (k, j)),
            ],
            out_specs=pl.BlockSpec((n_topics, tile_d), lambda j, k: (0, j)),
            scratch_shapes=[pltpu.VMEM((n_topics, tile_d), jnp.float32)],
        ),
        compiler_params=pltpu.CompilerParams(
            dimension_semantics=("parallel", "arbitrary"),
            vmem_limit_bytes=vmem_limit,
        ),
        cost_estimate=ce,
    )(probs_c, emb_c)


# --------------------------------------------------------------------------
# Self-test
# --------------------------------------------------------------------------
if __name__ == "__main__":
    n_topics = 16
    key = jax.random.PRNGKey(0)
    k_emb, k_probs, k_emb2, k_probs2 = jax.random.split(key, 4)

    def bf16_ref(p, e):
        # Replicates the kernel math: bf16-rounded inputs, f32 accumulation.
        return jnp.matmul(p.astype(jnp.bfloat16).astype(jnp.float32).T,
                          e.astype(jnp.bfloat16).astype(jnp.float32))

    # --- default (single-block) path: 8 docs, 16 topics, d_doc = 768 ---
    n_docs, d_doc = 8, 768
    doc_emb = jax.random.normal(k_emb, (n_docs, d_doc), dtype=jnp.float32)
    logits = jax.random.normal(k_probs, (n_docs, n_topics), dtype=jnp.float32)
    probs = jax.nn.softmax(logits, axis=-1)

    topic_emb = jax.block_until_ready(topic_embedding(probs, doc_emb))
    assert topic_emb.shape == (n_topics, d_doc)
    assert float(jnp.max(jnp.abs(topic_emb - bf16_ref(probs, doc_emb)))) < 1e-4
    assert float(jnp.max(jnp.abs(topic_emb - probs.T @ doc_emb))) < 5e-2

    # --- K-tiled accumulator path (forced, small tiles) ---
    n_docs2, d_doc2 = 40, 768
    doc_emb2 = jax.random.normal(k_emb2, (n_docs2, d_doc2), dtype=jnp.float32)
    probs2 = jax.nn.softmax(
        jax.random.normal(k_probs2, (n_docs2, n_topics), dtype=jnp.float32),
        axis=-1)
    topic_emb2 = jax.block_until_ready(
        topic_embedding(probs2, doc_emb2, force_tiled=True, tile_k=16, tile_d=256))
    assert topic_emb2.shape == (n_topics, d_doc2)
    assert float(jnp.max(jnp.abs(topic_emb2 - bf16_ref(probs2, doc_emb2)))) < 1e-4

    print("KERNEL_OK")
</pallas_src>

<mosaic_0001>
module attributes {stable_mosaic.version = 11 : i64} {
  func.func @_topic_emb_kernel_small(%arg0: memref<8x16xbf16, #tpu.memory_space<vmem>>, %arg1: memref<8x768xbf16, #tpu.memory_space<vmem>>, %arg2: memref<16x768xf32, #tpu.memory_space<vmem>>) attributes {dimension_semantics = [], scalar_prefetch = 0 : i64, scratch_operands = 0 : i64, tpu.core_type = #tpu.core_type<tc>} {
    %c0 = arith.constant 0 : index
    %c0_0 = arith.constant 0 : index
    %0 = vector.load %arg0[%c0, %c0_0] : memref<8x16xbf16, #tpu.memory_space<vmem>>, vector<8x16xbf16>
    %c0_1 = arith.constant 0 : index
    %c0_2 = arith.constant 0 : index
    %1 = vector.load %arg1[%c0_1, %c0_2] : memref<8x768xbf16, #tpu.memory_space<vmem>>, vector<8x768xbf16>
    %cst = arith.constant dense<0.000000e+00> : vector<16x768xf32>
    %2 = tpu.matmul %0, %1, %cst {dimension_numbers = #tpu.dot_dimension_numbers<[0], [0], [1], [1], [0, 1, 1, 1], [], []>} : vector<8x16xbf16>, vector<8x768xbf16>, vector<16x768xf32> -> vector<16x768xf32>
    %c0_3 = arith.constant 0 : index
    %c0_4 = arith.constant 0 : index
    %3 = vector.load %arg2[%c0_3, %c0_4] : memref<16x768xf32, #tpu.memory_space<vmem>>, vector<16x768xf32>
    tpu.vector_store %arg2[%c0_3, %c0_4], %2 {strides = array<i32>} : memref<16x768xf32, #tpu.memory_space<vmem>>, vector<16x768xf32>,
    return
  }
}

</mosaic_0001>

<bundles_post_ra>
// kernel: tpu_custom_call.1
= control target key start
LH: loop header
LB: loop body
LE: loop exit
PB: predicated region body
PF: predicated region fallthrough
CT: control target
= control target key end

     0   :  { %7 = vsyncpa [#allocation3], 0  ;;  %s413_s0 = inlined_call_operand.hbm [shape: bf16[8,16], index: 0, kind: input, shape index: {}]   ;;  %s414_s1 = inlined_call_operand.hbm [shape: bf16[8,768], index: 1, kind: input, shape index: {}]   ;;  %s415_s2 = inlined_call_operand.hbm [shape: f32[16,768], index: 2, kind: output, shape index: {}]  }
   0x1   :  { %8 = vsyncpa [#allocation6], 0 }
   0x2   :  { %9 = vsyncpa [#allocation4], 0  ;;  %s350_s9 = smov [#allocation2]   ;;  %s351_s11 = smov [#allocation5]  }
   0x3   :  { %s16_s10 = sshll.u32 %s350_s9, 4  ;;  %s26_s12 = sshll.u32 %s351_s11, 4  ;;  %s17_s10 = int_to_ptr.vmem [resolvable:$true] %s16_s10  ;;  %s27_s12 = int_to_ptr.vmem [resolvable:$true] %s26_s12 }
   0x4   :  { %s278_s15 = scalar_lea.hbm %s413_s0, 64 }
   0x5   :  { %p279_p0 = scmp.ne.s32.totalorder %s413_s0, %s278_s15  ;;  %p282_p1 = scmp.lt.u32.totalorder %s278_s15, %s413_s0 }
   0x7   :  { %p284_p2 = pnand %p282_p1, %p279_p0 }
   0x9   :  { %287 = shalt.err (!%p284_p2)
}
   0xa   :  { %s288_s20 = scalar_lea.vmem %s17_s10, 64  ;;  %p293_p4 = scmp.lt.s32.totalorder %s17_s10, %s17_s10 }
   0xb   :  { %p289_p3 = scmp.ne.s32.totalorder %s17_s10, %s288_s20  ;;  %p294_p5 = scmp.lt.s32.totalorder %s288_s20, %s288_s20 }
   0xd   :  { %p295_p6 = por %p294_p5, %p293_p4 }
   0xf   :  { %p296_p7 = pnand %p295_p6, %p289_p3 }
  0x11   :  { %299 = shalt.err (!%p296_p7)
}
  0x12   :  { %19 = dma.hbm_to_vmem [thread:$0]  %s413_s0, 64, %s17_s10, [#allocation3]  }
  0x13   :  { %s300_s25 = scalar_lea.hbm %s414_s1, 384 }
  0x14   :  { %p301_p8 = scmp.ne.s32.totalorder %s414_s1, %s300_s25  ;;  %p304_p9 = scmp.lt.u32.totalorder %s300_s25, %s414_s1 }
  0x16   :  { %p306_p10 = pnand %p304_p9, %p301_p8 }
  0x18   :  { %309 = shalt.err (!%p306_p10)
}
  0x19   :  { %s310_s30 = scalar_lea.vmem %s27_s12, 384  ;;  %p315_p12 = scmp.lt.s32.totalorder %s27_s12, %s27_s12 }
  0x1a   :  { %p311_p11 = scmp.ne.s32.totalorder %s27_s12, %s310_s30  ;;  %p316_p13 = scmp.lt.s32.totalorder %s310_s30, %s310_s30 }
  0x1c   :  { %p317_p0 = por %p316_p13, %p315_p12 }
  0x1e   :  { %p318_p1 = pnand %p317_p0, %p311_p11 }
  0x20   :  { %321 = shalt.err (!%p318_p1)
}
  0x21   :  { %29 = dma.hbm_to_vmem [thread:$0]  %s414_s1, 384, %s27_s12, [#allocation6]  }
  0x22   :  { %344 = dma.done.wait [#allocation3], 64  }
  0x23   :  { %345 = vsyncadd [#allocation3], 4294967232 }
  0x24   :  { %346 = dma.done.wait [#allocation6], 384  }
  0x25   :  { %347 = vsyncadd [#allocation6], 4294966912  ;;  %v352_v0 = vmov 0   ;;  %v37_v1 = vld [vmem:[#allocation2] sm:$0xf]  ;;  %v38_v2 = vld [vmem:[#allocation5] sm:$0xff] }
  0x26   :  { %127 = vmatprep.mubr.bf16.mxu0 %v352_v0  ;;  %170 = vmatprep.mubr.bf16.mxu1 %v352_v0  ;;  %vm76_vm0 = vcmask 1043456   ;;  %v39_v3 = vld [vmem:[#allocation5 + $0x8] sm:$0xff]  ;;  %v255_v4 = vcombine.high %v38_v2, %v38_v2  ;;  %v254_v5 = vcombine.low %v38_v2, %v38_v2  ;;  %v40_v8 = vld [vmem:[#allocation5 + $0x10] sm:$0xff]  ;;  %vm72_vm1 = vcmask 64512   ;;  %s353_s1 = smov [#allocation7]  }
  0x27   :  { %41 = vxpose.xlu0.c.b16.start.end [1/1] (short) (narrow) %v37_v1, 16  ;;  %v257_v6 = vcombine.high %v39_v3, %v39_v3  ;;  %v256_v7 = vcombine.low %v39_v3, %v39_v3  ;;  %v259_v9 = vcombine.high %v40_v8, %v40_v8  ;;  %v258_v10 = vcombine.low %v40_v8, %v40_v8  ;;  %s241_s4 = sshll.u32 %s353_s1, 4  ;;  %s242_s4 = int_to_ptr.vmem [resolvable:$true] %s241_s4 }
  0x28   :  { %260 = vmatprep.subr.msk.bf16.mxu0 %vm76_vm0, %v255_v4  ;;  %v78_v11 = vsel %vm76_vm0, %v254_v5, 0  ;;  %s322_s5 = scalar_lea.vmem %s242_s4, 1536  ;;  %p327_p3 = scmp.lt.s32.totalorder %s242_s4, %s242_s4 }
  0x29   :  { %262 = vmatprep.subr.msk.bf16.mxu1 %vm76_vm0, %v257_v6  ;;  %v84_v12 = vsel %vm76_vm0, %v256_v7, 0  ;;  %96 = vmatpush1.bf16.msra.mxu0 %v78_v11  ;;  %v90_v13 = vsel %vm76_vm0, %v258_v10, 0  ;;  %p323_p2 = scmp.ne.s32.totalorder %s242_s4, %s322_s5  ;;  %p328_p4 = scmp.lt.s32.totalorder %s322_s5, %s322_s5 }
  0x2a   :  { %139 = vmatpush1.bf16.msra.mxu1 %v84_v12  ;;  %264 = vmatprep.subr.msk.bf16.mxu0 %vm76_vm0, %v259_v9 }
  0x2b   :  { %p329_p5 = por %p328_p4, %p327_p3 }
  0x2d   :  { %p330_p6 = pnand %p329_p5, %p323_p2 }
  0x8d   :  { %v49_v14 = vpop.trf.xlu0 }
  0x8e   :  { %261 = vmatmul.mubr.msk.bf16.vlgmr.msra.gmra.mrb[0].mxu0 %vm72_vm1, %v49_v14  ;;  %263 = vmatmul.mubr.msk.bf16.vlgmr.msra.gmra.mrb[0].mxu1 %vm72_vm1, %v49_v14 }
  0x8f   :  { %182 = vmatpush1.bf16.msra.mxu0 %v90_v13  ;;  %213 = vmatprep.mubr.bf16.mxu0 %v352_v0 }
  0x96   :  { %265 = vmatmul.mubr.msk.bf16.vlgmr.msra.gmra.mrb[4].mxu0 %vm72_vm1, %v49_v14 }
 0x161   :  { %v129_v15 = vpop.f32.mrb[0].mxu0  ;;  %v172_v16 = vpop.f32.mrb[0].mxu1 }
 0x162   :  { %224 = vst [vmem:[#allocation7] sm:$0xff] %v129_v15  ;;  %226 = vst [vmem:[#allocation7 + $0x10] sm:$0xff] %v172_v16  ;;  %v131_v17 = vpop.f32.mrb[1].mxu0  ;;  %v174_v18 = vpop.f32.mrb[1].mxu1 }
 0x163   :  { %225 = vst [vmem:[#allocation7 + $0x8] sm:$0xff] %v131_v17  ;;  %227 = vst [vmem:[#allocation7 + $0x18] sm:$0xff] %v174_v18  ;;  %v133_v19 = vpop.f32.mrb[2].mxu0  ;;  %v176_v20 = vpop.f32.mrb[2].mxu1 }
 0x164   :  { %230 = vst [vmem:[#allocation7 + $0x30] sm:$0xff] %v133_v19  ;;  %232 = vst [vmem:[#allocation7 + $0x40] sm:$0xff] %v176_v20  ;;  %v135_v21 = vpop.f32.mrb[3].mxu0  ;;  %v178_v22 = vpop.f32.mrb[3].mxu1 }
 0x165   :  { %231 = vst [vmem:[#allocation7 + $0x38] sm:$0xff] %v135_v21  ;;  %233 = vst [vmem:[#allocation7 + $0x48] sm:$0xff] %v178_v22 }
 0x169   :  { %v215_v23 = vpop.f32.mrb[4].mxu0 }
 0x16a   :  { %228 = vst [vmem:[#allocation7 + $0x20] sm:$0xff] %v215_v23  ;;  %v217_v24 = vpop.f32.mrb[5].mxu0 }
 0x16b   :  { %229 = vst [vmem:[#allocation7 + $0x28] sm:$0xff] %v217_v24  ;;  %v219_v25 = vpop.f32.mrb[6].mxu0 }
 0x16c   :  { %234 = vst [vmem:[#allocation7 + $0x50] sm:$0xff] %v219_v25  ;;  %v221_v26 = vpop.f32.mrb[7].mxu0 }
 0x16d   :  { %235 = vst [vmem:[#allocation7 + $0x58] sm:$0xff] %v221_v26 }
 0x16e   :  { %333 = shalt.err (!%p330_p6)
}
 0x16f   :  { %s334_s8 = scalar_lea.hbm %s415_s2, 1536 }
 0x170   :  { %p335_p7 = scmp.ne.s32.totalorder %s415_s2, %s334_s8  ;;  %p338_p8 = scmp.lt.u32.totalorder %s334_s8, %s415_s2 }
 0x172   :  { %p340_p9 = pnand %p338_p8, %p335_p7 }
 0x174   :  { %343 = shalt.err (!%p340_p9)
}
 0x175   :  { %s354_s13 = smov 768   ;;  %s355_s14 = smov 48  }
 0x176   :  { %247 = dma.vmem_to_hbm [thread:$0]  %s242_s4, 1536, %s415_s2, [#allocation4], %s354_s13, %s354_s13, %s355_s14  }
 0x177   :  { %348 = dma.done.wait [#allocation4], 1536  }
 0x178   :  { %349 = vsyncadd [#allocation4], 4294965760 }
 0x179   :  { %251 = vsyncpa [#allocation3], 1 }
 0x17a   :  { %252 = vsyncpa [#allocation6], 1 }
 0x17b   :  { %253 = vsyncpa [#allocation4], 1 }

</bundles_post_ra>
